<compile_context>
chip_gen: v7x
topology: tpu7x:2x2x1
jax: 0.10.0
libtpu: 0.0.40
codegen_flags: <defaults>
</compile_context>

<pallas_src>
import jax
import jax.numpy as jnp
from jax.experimental import pallas as pl
from jax.experimental.pallas import tpu as pltpu


# ---------------------------------------------------------------------------
# Fused MLP kernel: (Linear + ReLU) x2 + Linear(->1) + Sigmoid
# ---------------------------------------------------------------------------
def _discriminator_kernel(z_ref, w1_ref, b1_ref, w2_ref, b2_ref,
                          w3_ref, b3_ref, o_ref):
    # z_ref: (bm, L)            batch tile of latents
    # w1_ref: (L, 512)  b1_ref: (1, 512)
    # w2_ref: (512, 256) b2_ref: (1, 256)
    # w3_ref: (1, 256)   b3_ref: (1, 1)
    # o_ref: (bm, 1)
    z = z_ref[...]

    # Layer 1: MXU matmul (512 lanes, nicely aligned), f32 accumulate.
    h = jnp.dot(z, w1_ref[...], preferred_element_type=jnp.float32) + b1_ref[...]
    h = jnp.maximum(h, 0.0)  # ReLU

    # Layer 2: MXU matmul (256 lanes).
    h = jnp.dot(h, w2_ref[...], preferred_element_type=jnp.float32) + b2_ref[...]
    h = jnp.maximum(h, 0.0)  # ReLU

    # Layer 3: output width 1 -> keep it OFF the MXU (N=1 matmul wastes the
    # systolic array).  VPU multiply + cross-lane reduction instead.
    logits = jnp.sum(h * w3_ref[...], axis=-1, keepdims=True) + b3_ref[...]

    # Sigmoid (explicit form; EUP exp + reciprocal).
    o_ref[...] = (1.0 / (1.0 + jnp.exp(-logits))).astype(o_ref.dtype)


def discriminator_forward(z, params, *, bm_max=512):
    """z: (B, L) float32 -> validity (B, 1) float32."""
    B, L = z.shape
    w1, b1 = params["w1"], params["b1"]
    w2, b2 = params["w2"], params["b2"]
    w3, b3 = params["w3"], params["b3"]
    H1 = w1.shape[1]
    H2 = w2.shape[1]

    # Batch tile: multiple of 8 (sublane), capped; pad batch so cdiv grid has
    # no remainder (padded rows are sliced off afterward).
    bm = min(bm_max, max(8, B))
    bm = ((bm + 7) // 8) * 8
    n_tiles = pl.cdiv(B, bm)
    Bp = n_tiles * bm
    if Bp != B:
        z = jnp.pad(z, ((0, Bp - B), (0, 0)))

    out = pl.pallas_call(
        _discriminator_kernel,
        out_shape=jax.ShapeDtypeStruct((Bp, 1), jnp.float32),
        grid=(n_tiles,),
        in_specs=[
            pl.BlockSpec((bm, L), lambda i: (i, 0)),     # z batch tile
            pl.BlockSpec((L, H1), lambda i: (0, 0)),     # w1 (resident)
            pl.BlockSpec((1, H1), lambda i: (0, 0)),     # b1 (resident)
            pl.BlockSpec((H1, H2), lambda i: (0, 0)),    # w2 (resident)
            pl.BlockSpec((1, H2), lambda i: (0, 0)),     # b2 (resident)
            pl.BlockSpec((1, H2), lambda i: (0, 0)),     # w3 row (resident)
            pl.BlockSpec((1, 1), lambda i: (0, 0)),      # b3 (resident)
        ],
        out_specs=pl.BlockSpec((bm, 1), lambda i: (i, 0)),
        compiler_params=pltpu.CompilerParams(
            dimension_semantics=("parallel",),
        ),
    )(z, w1, b1, w2, b2, w3, b3)

    return out[:B]


# ---------------------------------------------------------------------------
# Plain-JAX reference (same math) for correctness check
# ---------------------------------------------------------------------------
def discriminator_ref(z, params):
    h = jnp.maximum(z @ params["w1"] + params["b1"], 0.0)
    h = jnp.maximum(h @ params["w2"] + params["b2"], 0.0)
    logits = h @ params["w3"].T + params["b3"]
    return 1.0 / (1.0 + jnp.exp(-logits))


# ---------------------------------------------------------------------------
# Main
# ---------------------------------------------------------------------------
if __name__ == "__main__":
    LATENT = 100   # module default latent_size=100
    BATCH = 8

    key = jax.random.PRNGKey(0)
    k0, k1, k2, k3, k4, k5, k6 = jax.random.split(key, 7)

    # Parameters stored as (in, out) so the kernel computes x @ W + b,
    # equivalent to PyTorch nn.Linear's x @ W.T + b with W = (out, in).
    params = {
        "w1": (jax.random.normal(k0, (LATENT, 512), jnp.float32)
               / jnp.sqrt(float(LATENT))),
        "b1": 0.01 * jax.random.normal(k1, (1, 512), jnp.float32),
        "w2": (jax.random.normal(k2, (512, 256), jnp.float32)
               / jnp.sqrt(512.0)),
        "b2": 0.01 * jax.random.normal(k3, (1, 256), jnp.float32),
        "w3": (jax.random.normal(k4, (1, 256), jnp.float32)
               / jnp.sqrt(256.0)),
        "b3": 0.01 * jax.random.normal(k5, (1, 1), jnp.float32),
    }

    z = jax.random.normal(k6, (BATCH, LATENT), jnp.float32)

    fwd = jax.jit(discriminator_forward)
    out = jax.block_until_ready(fwd(z, params))

    ref = discriminator_ref(z, params)

    assert out.shape == (BATCH, 1), out.shape
    assert out.dtype == jnp.float32
    assert bool(jnp.isfinite(out).all())
    assert bool(((out > 0.0) & (out < 1.0)).all())           # sigmoid range
    assert bool(jnp.allclose(out, ref, atol=1e-5, rtol=1e-5))

    print("KERNEL_OK")
</pallas_src>

<mosaic_0001>
module attributes {stable_mosaic.version = 11 : i64} {
  func.func @_discriminator_kernel(%arg0: i32, %arg1: memref<8x100xf32, #tpu.memory_space<vmem>>, %arg2: memref<100x512xf32, #tpu.memory_space<vmem>>, %arg3: memref<1x512xf32, #tpu.memory_space<vmem>>, %arg4: memref<512x256xf32, #tpu.memory_space<vmem>>, %arg5: memref<1x256xf32, #tpu.memory_space<vmem>>, %arg6: memref<1x256xf32, #tpu.memory_space<vmem>>, %arg7: memref<1x1xf32, #tpu.memory_space<vmem>>, %arg8: memref<8x1xf32, #tpu.memory_space<vmem>>) attributes {dimension_semantics = [#tpu.dimension_semantics<parallel>], iteration_bounds = array<i64: 1>, scalar_prefetch = 0 : i64, scratch_operands = 0 : i64, tpu.core_type = #tpu.core_type<tc>, window_params = [{transform_indices = @transform_0, window_bounds = array<i64: 8, 100>}, {pipeline_mode = #tpu.pipeline_mode<synchronous>, transform_indices = @transform_1, window_bounds = array<i64: 100, 512>}, {pipeline_mode = #tpu.pipeline_mode<synchronous>, transform_indices = @transform_2, window_bounds = array<i64: 1, 512>}, {pipeline_mode = #tpu.pipeline_mode<synchronous>, transform_indices = @transform_3, window_bounds = array<i64: 512, 256>}, {pipeline_mode = #tpu.pipeline_mode<synchronous>, transform_indices = @transform_4, window_bounds = array<i64: 1, 256>}, {pipeline_mode = #tpu.pipeline_mode<synchronous>, transform_indices = @transform_5, window_bounds = array<i64: 1, 256>}, {pipeline_mode = #tpu.pipeline_mode<synchronous>, transform_indices = @transform_6, window_bounds = array<i64: 1, 1>}, {transform_indices = @transform_7, window_bounds = array<i64: 8, 1>}]} {
    %c0 = arith.constant 0 : index
    %c0_0 = arith.constant 0 : index
    %0 = vector.load %arg1[%c0, %c0_0] : memref<8x100xf32, #tpu.memory_space<vmem>>, vector<8x100xf32>
    %c0_1 = arith.constant 0 : index
    %c0_2 = arith.constant 0 : index
    %1 = vector.load %arg2[%c0_1, %c0_2] : memref<100x512xf32, #tpu.memory_space<vmem>>, vector<100x512xf32>
    %cst = arith.constant dense<0.000000e+00> : vector<8x512xf32>
    %2 = tpu.matmul %0, %1, %cst {dimension_numbers = #tpu.dot_dimension_numbers<[1], [0], [0], [1], [0, 0, 1, 1], [], []>} : vector<8x100xf32>, vector<100x512xf32>, vector<8x512xf32> -> vector<8x512xf32>
    %c0_3 = arith.constant 0 : index
    %c0_4 = arith.constant 0 : index
    %3 = vector.load %arg3[%c0_3, %c0_4] : memref<1x512xf32, #tpu.memory_space<vmem>>, vector<1x512xf32>
    %4 = vector.broadcast %3 : vector<1x512xf32> to vector<8x512xf32>
    %5 = arith.addf %2, %4 : vector<8x512xf32>
    %cst_5 = arith.constant 0.000000e+00 : f32
    %6 = vector.broadcast %cst_5 : f32 to vector<8x512xf32>
    %7 = arith.maximumf %5, %6 : vector<8x512xf32>
    %c0_6 = arith.constant 0 : index
    %c0_7 = arith.constant 0 : index
    %8 = vector.load %arg4[%c0_6, %c0_7] : memref<512x256xf32, #tpu.memory_space<vmem>>, vector<512x256xf32>
    %cst_8 = arith.constant dense<0.000000e+00> : vector<8x256xf32>
    %9 = tpu.matmul %7, %8, %cst_8 {dimension_numbers = #tpu.dot_dimension_numbers<[1], [0], [0], [1], [0, 0, 1, 1], [], []>} : vector<8x512xf32>, vector<512x256xf32>, vector<8x256xf32> -> vector<8x256xf32>
    %c0_9 = arith.constant 0 : index
    %c0_10 = arith.constant 0 : index
    %10 = vector.load %arg5[%c0_9, %c0_10] : memref<1x256xf32, #tpu.memory_space<vmem>>, vector<1x256xf32>
    %11 = vector.broadcast %10 : vector<1x256xf32> to vector<8x256xf32>
    %12 = arith.addf %9, %11 : vector<8x256xf32>
    %cst_11 = arith.constant 0.000000e+00 : f32
    %13 = vector.broadcast %cst_11 : f32 to vector<8x256xf32>
    %14 = arith.maximumf %12, %13 : vector<8x256xf32>
    %c0_12 = arith.constant 0 : index
    %c0_13 = arith.constant 0 : index
    %15 = vector.load %arg6[%c0_12, %c0_13] : memref<1x256xf32, #tpu.memory_space<vmem>>, vector<1x256xf32>
    %16 = vector.broadcast %15 : vector<1x256xf32> to vector<8x256xf32>
    %17 = arith.mulf %14, %16 : vector<8x256xf32>
    %cst_14 = arith.constant dense<0.000000e+00> : vector<8xf32>
    %18 = vector.multi_reduction <add>, %17, %cst_14 [1] : vector<8x256xf32> to vector<8xf32>
    %19 = vector.shape_cast %18 : vector<8xf32> to vector<8x1xf32>
    %c0_15 = arith.constant 0 : index
    %c0_16 = arith.constant 0 : index
    %20 = vector.load %arg7[%c0_15, %c0_16] : memref<1x1xf32, #tpu.memory_space<vmem>>, vector<1x1xf32>
    %21 = vector.broadcast %20 : vector<1x1xf32> to vector<8x1xf32>
    %22 = arith.addf %19, %21 : vector<8x1xf32>
    %cst_17 = arith.constant 0.000000e+00 : f32
    %23 = vector.broadcast %cst_17 : f32 to vector<8x1xf32>
    %24 = arith.subf %23, %22 : vector<8x1xf32>
    %25 = math.exp %24 : vector<8x1xf32>
    %cst_18 = arith.constant 1.000000e+00 : f32
    %26 = vector.broadcast %cst_18 : f32 to vector<8x1xf32>
    %27 = arith.addf %26, %25 : vector<8x1xf32>
    %cst_19 = arith.constant 1.000000e+00 : f32
    %28 = vector.broadcast %cst_19 : f32 to vector<8x1xf32>
    %29 = arith.divf %28, %27 : vector<8x1xf32>
    %c0_20 = arith.constant 0 : index
    %c0_21 = arith.constant 0 : index
    %30 = vector.load %arg8[%c0_20, %c0_21] : memref<8x1xf32, #tpu.memory_space<vmem>>, vector<8x1xf32>
    tpu.vector_store %arg8[%c0_20, %c0_21], %29 {strides = array<i32>} : memref<8x1xf32, #tpu.memory_space<vmem>>, vector<8x1xf32>,
    return
  }
  func.func @transform_0(%arg0: i32) -> (i32, i32) {
    %c0_i32 = arith.constant 0 : i32
    %c0_i32_0 = arith.constant 0 : i32
    return %arg0, %c0_i32 : i32, i32
  }
  func.func @transform_1(%arg0: i32) -> (i32, i32) {
    %c0_i32 = arith.constant 0 : i32
    %c0_i32_0 = arith.constant 0 : i32
    %c0_i32_1 = arith.constant 0 : i32
    return %c0_i32, %c0_i32_0 : i32, i32
  }
  func.func @transform_2(%arg0: i32) -> (i32, i32) {
    %c0_i32 = arith.constant 0 : i32
    %c0_i32_0 = arith.constant 0 : i32
    %c0_i32_1 = arith.constant 0 : i32
    return %c0_i32, %c0_i32_0 : i32, i32
  }
  func.func @transform_3(%arg0: i32) -> (i32, i32) {
    %c0_i32 = arith.constant 0 : i32
    %c0_i32_0 = arith.constant 0 : i32
    %c0_i32_1 = arith.constant 0 : i32
    return %c0_i32, %c0_i32_0 : i32, i32
  }
  func.func @transform_4(%arg0: i32) -> (i32, i32) {
    %c0_i32 = arith.constant 0 : i32
    %c0_i32_0 = arith.constant 0 : i32
    %c0_i32_1 = arith.constant 0 : i32
    return %c0_i32, %c0_i32_0 : i32, i32
  }
  func.func @transform_5(%arg0: i32) -> (i32, i32) {
    %c0_i32 = arith.constant 0 : i32
    %c0_i32_0 = arith.constant 0 : i32
    %c0_i32_1 = arith.constant 0 : i32
    return %c0_i32, %c0_i32_0 : i32, i32
  }
  func.func @transform_6(%arg0: i32) -> (i32, i32) {
    %c0_i32 = arith.constant 0 : i32
    %c0_i32_0 = arith.constant 0 : i32
    %c0_i32_1 = arith.constant 0 : i32
    return %c0_i32, %c0_i32_0 : i32, i32
  }
  func.func @transform_7(%arg0: i32) -> (i32, i32) {
    %c0_i32 = arith.constant 0 : i32
    %c0_i32_0 = arith.constant 0 : i32
    return %arg0, %c0_i32 : i32, i32
  }
}

</mosaic_0001>

<bundles_post_ra>
// kernel: discriminator_forward.1
= control target key start
LH: loop header
LB: loop body
LE: loop exit
PB: predicated region body
PF: predicated region fallthrough
CT: control target
= control target key end

     0   :  { %s1002_s0 = inlined_call_operand.hbm [shape: f32[8,100], index: 0, kind: input, shape index: {}]   ;;  %s1003_s1 = inlined_call_operand.hbm [shape: f32[100,512], index: 1, kind: input, shape index: {}]   ;;  %s1004_s2 = inlined_call_operand.vmem [shape: f32[1,512], index: 2, kind: input, shape index: {}]   ;;  %s1005_s3 = inlined_call_operand.hbm [shape: f32[512,256], index: 3, kind: input, shape index: {}]   ;;  %s1006_s4 = inlined_call_operand.vmem [shape: f32[1,256], index: 4, kind: input, shape index: {}]   ;;  %s1007_s5 = inlined_call_operand.vmem [shape: f32[1,256], index: 5, kind: input, shape index: {}]   ;;  %s1008_s6 = inlined_call_operand.<no memory space> [shape: f32[1,1], index: 6, kind: input, shape index: {}]   ;;  %s1009_s7 = inlined_call_operand.vmem [shape: f32[8,1], index: 7, kind: output, shape index: {}]  }
   0x1   :  { %v12_v0 = vstv %s1008_s6 }
   0x2   :  { %13 = vst [vmem:[#allocation2] sm:$0x1] %v12_v0 }
   0x3   :  { %14 = vsyncpa [#allocation4], 0 }
   0x4   :  { %15 = vsyncpa [#allocation6], 0  ;;  %s897_s26 = smov [#allocation5]   ;;  %s827_s30 = scalar_lea.hbm %s1003_s1, 6656 }
   0x5   :  { %s31_s27 = sshll.u32 %s897_s26, 4  ;;  %p828_p0 = scmp.ne.s32.totalorder %s1003_s1, %s827_s30  ;;  %s32_s27 = int_to_ptr.vmem [resolvable:$true] %s31_s27 }
   0x6   :  { %p831_p1 = scmp.lt.u32.totalorder %s827_s30, %s1003_s1 }
   0x8   :  { %p833_p2 = pnand %p831_p1, %p828_p0 }
   0xa   :  { %836 = shalt.err (!%p833_p2)
}
   0xb   :  { %s837_s6 = scalar_lea.vmem %s32_s27, 6656  ;;  %p842_p4 = scmp.lt.s32.totalorder %s32_s27, %s32_s27 }
   0xc   :  { %p838_p3 = scmp.ne.s32.totalorder %s32_s27, %s837_s6  ;;  %p843_p5 = scmp.lt.s32.totalorder %s837_s6, %s837_s6 }
   0xe   :  { %p844_p6 = por %p843_p5, %p842_p4 }
  0x10   :  { %p845_p7 = pnand %p844_p6, %p838_p3 }
  0x12   :  { %848 = shalt.err (!%p845_p7)
}
  0x13   :  { %s898_s12 = smov 512   ;;  %s899_s13 = smov 32  }
  0x14   :  { %37 = dma.hbm_to_vmem [thread:$0]  %s1003_s1, 6656, %s32_s27, [#allocation6], %s898_s12, %s898_s12, %s899_s13  }
  0x15   :  { %s900_s16 = smov [#allocation3]   ;;  %s901_s18 = smov [#allocation7]  }
  0x16   :  { %s22_s17 = sshll.u32 %s900_s16, 4  ;;  %s45_s19 = sshll.u32 %s901_s18, 4  ;;  %s23_s17 = int_to_ptr.vmem [resolvable:$true] %s22_s17  ;;  %s46_s19 = int_to_ptr.vmem [resolvable:$true] %s45_s19 }
  0x17   :  { %s849_s22 = scalar_lea.hbm %s1002_s0, 128 }
  0x18   :  { %p850_p8 = scmp.ne.s32.totalorder %s1002_s0, %s849_s22  ;;  %p853_p9 = scmp.lt.u32.totalorder %s849_s22, %s1002_s0 }
  0x1a   :  { %p855_p10 = pnand %p853_p9, %p850_p8 }
  0x1c   :  { %858 = shalt.err (!%p855_p10)
}
  0x1d   :  { %s859_s1 = scalar_lea.vmem %s23_s17, 128  ;;  %p864_p12 = scmp.lt.s32.totalorder %s23_s17, %s23_s17 }
  0x1e   :  { %p860_p11 = scmp.ne.s32.totalorder %s23_s17, %s859_s1  ;;  %p865_p13 = scmp.lt.s32.totalorder %s859_s1, %s859_s1 }
  0x20   :  { %p866_p0 = por %p865_p13, %p864_p12 }
  0x22   :  { %p867_p1 = pnand %p866_p0, %p860_p11 }
  0x24   :  { %870 = shalt.err (!%p867_p1)
}
  0x25   :  { %25 = dma.hbm_to_vmem [thread:$0]  %s1002_s0, 128, %s23_s17, [#allocation4]  }
  0x26   :  { %s871_s8 = scalar_lea.hbm %s1005_s3, 16384 }
  0x27   :  { %p872_p2 = scmp.ne.s32.totalorder %s1005_s3, %s871_s8  ;;  %p875_p3 = scmp.lt.u32.totalorder %s871_s8, %s1005_s3 }
  0x29   :  { %p877_p4 = pnand %p875_p3, %p872_p2 }
  0x2b   :  { %880 = shalt.err (!%p877_p4)
}
  0x2c   :  { %s881_s12 = scalar_lea.vmem %s46_s19, 16384  ;;  %p886_p6 = scmp.lt.s32.totalorder %s46_s19, %s46_s19 }
  0x2d   :  { %p882_p5 = scmp.ne.s32.totalorder %s46_s19, %s881_s12  ;;  %p887_p7 = scmp.lt.s32.totalorder %s881_s12, %s881_s12 }
  0x2f   :  { %p888_p8 = por %p887_p7, %p886_p6 }
  0x31   :  { %p889_p9 = pnand %p888_p8, %p882_p5 }
  0x33   :  { %892 = shalt.err (!%p889_p9)
}
  0x34   :  { %s902_s0 = smov 256   ;;  %s903_s13 = smov 16  }
  0x35   :  { %51 = dma.hbm_to_vmem [thread:$0]  %s1005_s3, 16384, %s46_s19, [#allocation6], %s902_s0, %s902_s0, %s903_s13  }
  0x36   :  { %893 = dma.done.wait [#allocation4], 128  }
  0x37   :  { %894 = vsyncadd [#allocation4], 4294967168 }
  0x38   :  { %895 = dma.done.wait [#allocation6], 23040  }
  0x39   :  { %896 = vsyncadd [#allocation6], 4294944256  ;;  %v904_v1 = vmov 0.0   ;;  %v69_v2 = vld [vmem:[#allocation5 + $0x8] sm:$0xff]  ;;  %v71_v4 = vld [vmem:[#allocation5 + $0x18] sm:$0xff]  ;;  %vm146_vm0 = vcmask 1043456  }
  0x3a   :  { %223 = vmatprep.mubr.f32.mxu0 %v904_v1  ;;  %294 = vmatprep.mubr.f32.mxu1 %v904_v1  ;;  %v73_v3 = vld [vmem:[#allocation5 + $0x28] sm:$0xff]  ;;  %v75_v6 = vld [vmem:[#allocation5 + $0x38] sm:$0xff]  ;;  %v68_v7 = vld [vmem:[#allocation5] sm:$0xff]  ;;  %vm142_vm1 = vcmask 818176   ;;  %vm620_vm2 = vcmask 7168  }
  0x3b   :  { %v635_v5 = vpack.c.bf16 %v73_v3, %v69_v2  ;;  %v72_v8 = vld [vmem:[#allocation5 + $0x20] sm:$0xff]  ;;  %v659_v9 = vpack.c.bf16 %v75_v6, %v71_v4  ;;  %v70_v11 = vld [vmem:[#allocation5 + $0x10] sm:$0xff]  ;;  %v77_v13 = vld [vmem:[#allocation5 + $0x48] sm:$0xff] }
  0x3c   :  { %v637_v10 = vpack.c.bf16 %v72_v8, %v68_v7  ;;  %v74_v12 = vld [vmem:[#allocation5 + $0x30] sm:$0xff]  ;;  %v81_v15 = vld [vmem:[#allocation5 + $0x68] sm:$0xff]  ;;  %v79_v16 = vld [vmem:[#allocation5 + $0x58] sm:$0xff] }
  0x3d   :  { %636 = vmatprep.subr.bf16.mxu0 %v635_v5  ;;  %v661_v14 = vpack.c.bf16 %v74_v12, %v70_v11  ;;  %v83_v17 = vld [vmem:[#allocation5 + $0x78] sm:$0xff]  ;;  %660 = vmatprep.subr.bf16.mxu1 %v659_v9  ;;  %v639_v18 = vpack.c.bf16 %v81_v15, %v77_v13  ;;  %v76_v20 = vld [vmem:[#allocation5 + $0x40] sm:$0xff]  ;;  %v78_v22 = vld [vmem:[#allocation5 + $0x50] sm:$0xff] }
  0x3e   :  { %638 = vmatpush1.bf16.msra.mxu0 %v637_v10  ;;  %v663_v19 = vpack.c.bf16 %v83_v17, %v79_v16  ;;  %v80_v21 = vld [vmem:[#allocation5 + $0x60] sm:$0xff]  ;;  %v82_v24 = vld [vmem:[#allocation5 + $0x70] sm:$0xff]  ;;  %v85_v25 = vld [vmem:[#allocation5 + $0x88] sm:$0xff] }
  0x3f   :  { %662 = vmatpush1.bf16.msra.mxu1 %v661_v14  ;;  %v641_v23 = vpack.c.bf16 %v80_v21, %v76_v20  ;;  %v89_v26 = vld [vmem:[#allocation5 + $0xa8] sm:$0xff]  ;;  %640 = vmatprep.subr.bf16.mxu0 %v639_v18  ;;  %v665_v27 = vpack.c.bf16 %v82_v24, %v78_v22  ;;  %v87_v29 = vld [vmem:[#allocation5 + $0x98] sm:$0xff]  ;;  %v84_v31 = vld [vmem:[#allocation5 + $0x80] sm:$0xff] }
  0x40   :  { %664 = vmatprep.subr.bf16.mxu1 %v663_v19  ;;  %v643_v28 = vpack.c.bf16 %v89_v26, %v85_v25  ;;  %v91_v30 = vld [vmem:[#allocation5 + $0xb8] sm:$0xff]  ;;  %v88_v33 = vld [vmem:[#allocation5 + $0xa0] sm:$0xff]  ;;  %v86_v34 = vld [vmem:[#allocation5 + $0x90] sm:$0xff] }
  0x41   :  { %v667_v32 = vpack.c.bf16 %v91_v30, %v87_v29  ;;  %v90_v35 = vld [vmem:[#allocation5 + $0xb0] sm:$0xff]  ;;  %v645_v36 = vpack.c.bf16 %v88_v33, %v84_v31  ;;  %v93_v37 = vld [vmem:[#allocation5 + $0xc8] sm:$0xff]  ;;  %v95_v39 = vld [vmem:[#allocation5 + $0xd8] sm:$0xff] }
  0x42   :  { %642 = vmatpush1.bf16.msra.mxu0 %v641_v23  ;;  %v97_v38 = vld [vmem:[#allocation5 + $0xe8] sm:$0xff]  ;;  %v669_v40 = vpack.c.bf16 %v90_v35, %v86_v34  ;;  %v99_v42 = vld [vmem:[#allocation5 + $0xf8] sm:$0xff]  ;;  %v92_v43 = vld [vmem:[#allocation5 + $0xc0] sm:$0xff] }
  0x43   :  { %666 = vmatpush1.bf16.msra.mxu1 %v665_v27  ;;  %644 = vmatprep.subr.bf16.mxu0 %v643_v28  ;;  %v647_v41 = vpack.c.bf16 %v97_v38, %v93_v37  ;;  %v96_v44 = vld [vmem:[#allocation5 + $0xe0] sm:$0xff]  ;;  %v671_v45 = vpack.c.bf16 %v99_v42, %v95_v39  ;;  %v94_v46 = vld [vmem:[#allocation5 + $0xd0] sm:$0xff]  ;;  %v101_v48 = vld [vmem:[#allocation5 + $0x108] sm:$0xff] }
  0x44   :  { %668 = vmatprep.subr.bf16.mxu1 %v667_v32  ;;  %v98_v47 = vld [vmem:[#allocation5 + $0xf0] sm:$0xff]  ;;  %v105_v49 = vld [vmem:[#allocation5 + $0x128] sm:$0xff]  ;;  %v103_v50 = vld [vmem:[#allocation5 + $0x118] sm:$0xff]  ;;  %v649_v52 = vpack.c.bf16 %v96_v44, %v92_v43 }
  0x45   :  { %v107_v51 = vld [vmem:[#allocation5 + $0x138] sm:$0xff]  ;;  %v673_v53 = vpack.c.bf16 %v98_v47, %v94_v46  ;;  %v651_v54 = vpack.c.bf16 %v105_v49, %v101_v48  ;;  %v100_v55 = vld [vmem:[#allocation5 + $0x100] sm:$0xff]  ;;  %v102_v57 = vld [vmem:[#allocation5 + $0x110] sm:$0xff] }
  0x46   :  { %646 = vmatpush1.bf16.msra.mxu0 %v645_v36  ;;  %v104_v56 = vld [vmem:[#allocation5 + $0x120] sm:$0xff]  ;;  %v675_v58 = vpack.c.bf16 %v107_v51, %v103_v50  ;;  %v106_v59 = vld [vmem:[#allocation5 + $0x130] sm:$0xff]  ;;  %v109_v60 = vld [vmem:[#allocation5 + $0x148] sm:$0xff] }
  0x47   :  { %670 = vmatpush1.bf16.msra.mxu1 %v669_v40  ;;  %648 = vmatprep.subr.bf16.mxu0 %v647_v41  ;;  %v113_v61 = vld [vmem:[#allocation5 + $0x168] sm:$0xff]  ;;  %v111_v62 = vld [vmem:[#allocation5 + $0x158] sm:$0xff]  ;;  %v653_v0 = vpack.c.bf16 %v104_v56, %v100_v55  ;;  %v677_v1 = vpack.c.bf16 %v106_v59, %v102_v57  ;;  %v108_v3 = vld [vmem:[#allocation5 + $0x140] sm:$0xff] }
  0x48   :  { %672 = vmatprep.subr.bf16.mxu1 %v671_v45  ;;  %v115_v63 = vld [vmem:[#allocation5 + $0x178] sm:$0xff]  ;;  %v655_v2 = vpack.c.bf16 %v113_v61, %v109_v60  ;;  %v112_v4 = vld [vmem:[#allocation5 + $0x160] sm:$0xff]  ;;  %v110_v6 = vld [vmem:[#allocation5 + $0x150] sm:$0xff] }
  0x49   :  { %v679_v5 = vpack.c.bf16 %v115_v63, %v111_v62  ;;  %v114_v7 = vld [vmem:[#allocation5 + $0x170] sm:$0xff]  ;;  %v657_v8 = vpack.c.bf16 %v112_v4, %v108_v3  ;;  %v117_v10 = vld [vmem:[#allocation5 + $0x188] sm:$0xf]  ;;  %v119_v11 = vld [vmem:[#allocation5 + $0x198] sm:$0xf] }
  0x4a   :  { %650 = vmatpush1.bf16.msra.mxu0 %v649_v52  ;;  %v681_v9 = vpack.c.bf16 %v114_v7, %v110_v6  ;;  %v306_v12 = vld [vmem:[#allocation7 + $0x8] sm:$0xff]  ;;  %v116_v13 = vld [vmem:[#allocation5 + $0x180] sm:$0xf]  ;;  %v308_v14 = vld [vmem:[#allocation7 + $0x18] sm:$0xff] }
  0x4b   :  { %674 = vmatpush1.bf16.msra.mxu1 %v673_v53  ;;  %652 = vmatprep.subr.bf16.mxu0 %v651_v54  ;;  %v370_v15 = vld [vmem:[#allocation7 + $0x208] sm:$0xff]  ;;  %v372_v16 = vld [vmem:[#allocation7 + $0x218] sm:$0xff]  ;;  %v118_v17 = vld [vmem:[#allocation5 + $0x190] sm:$0xf]  ;;  %v683_v25 = vpack.c.bf16 %v308_v14, %v306_v12 }
  0x4c   :  { %676 = vmatprep.subr.bf16.mxu1 %v675_v58  ;;  %v305_v18 = vld [vmem:[#allocation7] sm:$0xff]  ;;  %v307_v19 = vld [vmem:[#allocation7 + $0x10] sm:$0xff]  ;;  %v310_v22 = vld [vmem:[#allocation7 + $0x28] sm:$0xff]  ;;  %v747_v28 = vpack.c.bf16 %v372_v16, %v370_v15 }
  0x4d   :  { %v369_v20 = vld [vmem:[#allocation7 + $0x200] sm:$0xff]  ;;  %v371_v21 = vld [vmem:[#allocation7 + $0x210] sm:$0xff]  ;;  %v312_v23 = vld [vmem:[#allocation7 + $0x38] sm:$0xff]  ;;  %v685_v29 = vpack.c.bf16 %v307_v19, %v305_v18 }
  0x4e   :  { %654 = vmatpush1.bf16.msra.mxu0 %v653_v0  ;;  %v67_v24 = vld [vmem:[#allocation3] sm:$0xff]  ;;  %v374_v26 = vld [vmem:[#allocation7 + $0x228] sm:$0xff]  ;;  %v749_v30 = vpack.c.bf16 %v371_v21, %v369_v20  ;;  %v687_v31 = vpack.c.bf16 %v312_v23, %v310_v22  ;;  %v309_v32 = vld [vmem:[#allocation7 + $0x20] sm:$0xff] }
  0x4f   :  { %678 = vmatpush1.bf16.msra.mxu1 %v677_v1  ;;  %656 = vmatprep.subr.bf16.mxu0 %v655_v2  ;;  %v376_v27 = vld [vmem:[#allocation7 + $0x238] sm:$0xff]  ;;  %v311_v33 = vld [vmem:[#allocation7 + $0x30] sm:$0xff]  ;;  %v373_v34 = vld [vmem:[#allocation7 + $0x220] sm:$0xff] }
  0x50   :  { %680 = vmatprep.subr.bf16.mxu1 %v679_v5  ;;  %v751_v35 = vpack.c.bf16 %v376_v27, %v374_v26  ;;  %v375_v36 = vld [vmem:[#allocation7 + $0x230] sm:$0xff]  ;;  %v314_v37 = vld [vmem:[#allocation7 + $0x48] sm:$0xff]  ;;  %v316_v38 = vld [vmem:[#allocation7 + $0x58] sm:$0xff]  ;;  %v689_v41 = vpack.c.bf16 %v311_v33, %v309_v32 }
  0x51   :  { %v378_v39 = vld [vmem:[#allocation7 + $0x248] sm:$0xff]  ;;  %v380_v40 = vld [vmem:[#allocation7 + $0x258] sm:$0xff]  ;;  %v753_v42 = vpack.c.bf16 %v375_v36, %v373_v34  ;;  %v691_v43 = vpack.c.bf16 %v316_v38, %v314_v37  ;;  %v313_v44 = vld [vmem:[#allocation7 + $0x40] sm:$0xff] }
  0x52   :  { %658 = vmatpush1.bf16.msra.mxu0 %v657_v8  ;;  %v315_v45 = vld [vmem:[#allocation7 + $0x50] sm:$0xff]  ;;  %v377_v46 = vld [vmem:[#allocation7 + $0x240] sm:$0xff]  ;;  %v755_v47 = vpack.c.bf16 %v380_v40, %v378_v39  ;;  %v318_v49 = vld [vmem:[#allocation7 + $0x68] sm:$0xff] }
  0x53   :  { %682 = vmatpush1.bf16.msra.mxu1 %v681_v9  ;;  %628 = vmatprep.subr.msk.mxu0 %vm146_vm0, %v117_v10  ;;  %v379_v48 = vld [vmem:[#allocation7 + $0x250] sm:$0xff]  ;;  %v320_v50 = vld [vmem:[#allocation7 + $0x78] sm:$0xff]  ;;  %v382_v51 = vld [vmem:[#allocation7 + $0x268] sm:$0xff]  ;;  %v693_v53 = vpack.c.bf16 %v315_v45, %v313_v44 }
  0x54   :  { %631 = vmatprep.subr.msk.mxu1 %vm146_vm0, %v119_v11  ;;  %v384_v52 = vld [vmem:[#allocation7 + $0x278] sm:$0xff]  ;;  %v757_v54 = vpack.c.bf16 %v379_v48, %v377_v46  ;;  %v695_v55 = vpack.c.bf16 %v320_v50, %v318_v49  ;;  %v317_v56 = vld [vmem:[#allocation7 + $0x60] sm:$0xff]  ;;  %v319_v57 = vld [vmem:[#allocation7 + $0x70] sm:$0xff] }
  0x55   :  { %v381_v58 = vld [vmem:[#allocation7 + $0x260] sm:$0xff]  ;;  %v759_v59 = vpack.c.bf16 %v384_v52, %v382_v51  ;;  %v383_v60 = vld [vmem:[#allocation7 + $0x270] sm:$0xff]  ;;  %v322_v61 = vld [vmem:[#allocation7 + $0x88] sm:$0xff]  ;;  %v697_v1 = vpack.c.bf16 %v319_v57, %v317_v56 }
  0x56   :  { %629 = vmatpush1.msk.msra.mxu0 %vm146_vm0, %v116_v13  ;;  %v324_v62 = vld [vmem:[#allocation7 + $0x98] sm:$0xff]  ;;  %v386_v63 = vld [vmem:[#allocation7 + $0x288] sm:$0xff]  ;;  %v761_v2 = vpack.c.bf16 %v383_v60, %v381_v58  ;;  %v321_v4 = vld [vmem:[#allocation7 + $0x80] sm:$0xff] }
  0x57   :  { %632 = vmatpush1.msk.msra.mxu1 %vm146_vm0, %v118_v17  ;;  %630 = vmatmul.mubr.msk.f32.vlgmr.msra.gmra.mrb[0].mxu0 %vm142_vm1, %v67_v24  ;;  %v388_v0 = vld [vmem:[#allocation7 + $0x298] sm:$0xff]  ;;  %v699_v3 = vpack.c.bf16 %v324_v62, %v322_v61  ;;  %v323_v5 = vld [vmem:[#allocation7 + $0x90] sm:$0xff]  ;;  %v385_v6 = vld [vmem:[#allocation7 + $0x280] sm:$0xff] }
  0x58   :  { %633 = vmatmul.mubr.msk.f32.vlgmr.msra.gmra.mrb[0].mxu1 %vm142_vm1, %v67_v24  ;;  %684 = vmatprep.subr.bf16.mxu1 %v683_v25  ;;  %v763_v7 = vpack.c.bf16 %v388_v0, %v386_v63  ;;  %v387_v8 = vld [vmem:[#allocation7 + $0x290] sm:$0xff]  ;;  %v326_v9 = vld [vmem:[#allocation7 + $0xa8] sm:$0xff]  ;;  %v328_v10 = vld [vmem:[#allocation7 + $0xb8] sm:$0xff]  ;;  %v701_v13 = vpack.c.bf16 %v323_v5, %v321_v4 }
  0x59   :  { %748 = vmatprep.subr.bf16.mxu0 %v747_v28  ;;  %686 = vmatpush1.bf16.msra.mxu1 %v685_v29  ;;  %v390_v11 = vld [vmem:[#allocation7 + $0x2a8] sm:$0xff]  ;;  %v392_v12 = vld [vmem:[#allocation7 + $0x2b8] sm:$0xff]  ;;  %v765_v14 = vpack.c.bf16 %v387_v8, %v385_v6  ;;  %v703_v15 = vpack.c.bf16 %v328_v10, %v326_v9  ;;  %v325_v16 = vld [vmem:[#allocation7 + $0xa0] sm:$0xff] }
  0x5a   :  { %750 = vmatpush1.bf16.msra.mxu0 %v749_v30  ;;  %688 = vmatprep.subr.bf16.mxu1 %v687_v31  ;;  %v327_v17 = vld [vmem:[#allocation7 + $0xb0] sm:$0xff]  ;;  %v389_v18 = vld [vmem:[#allocation7 + $0x2a0] sm:$0xff]  ;;  %v767_v19 = vpack.c.bf16 %v392_v12, %v390_v11  ;;  %v330_v21 = vld [vmem:[#allocation7 + $0xc8] sm:$0xff] }
  0x5b   :  { %752 = vmatprep.subr.bf16.mxu0 %v751_v35  ;;  %v391_v20 = vld [vmem:[#allocation7 + $0x2b0] sm:$0xff]  ;;  %v332_v22 = vld [vmem:[#allocation7 + $0xd8] sm:$0xff]  ;;  %v394_v23 = vld [vmem:[#allocation7 + $0x2c8] sm:$0xff]  ;;  %v705_v25 = vpack.c.bf16 %v327_v17, %v325_v16 }
  0x5c   :  { %v396_v24 = vld [vmem:[#allocation7 + $0x2d8] sm:$0xff]  ;;  %v769_v26 = vpack.c.bf16 %v391_v20, %v389_v18  ;;  %v707_v27 = vpack.c.bf16 %v332_v22, %v330_v21  ;;  %v329_v28 = vld [vmem:[#allocation7 + $0xc0] sm:$0xff]  ;;  %v331_v29 = vld [vmem:[#allocation7 + $0xd0] sm:$0xff] }
  0x5d   :  { %690 = vmatpush1.bf16.msra.mxu1 %v689_v41  ;;  %v393_v30 = vld [vmem:[#allocation7 + $0x2c0] sm:$0xff]  ;;  %v771_v31 = vpack.c.bf16 %v396_v24, %v394_v23  ;;  %v395_v32 = vld [vmem:[#allocation7 + $0x2d0] sm:$0xff]  ;;  %v334_v33 = vld [vmem:[#allocation7 + $0xe8] sm:$0xff]  ;;  %v709_v37 = vpack.c.bf16 %v331_v29, %v329_v28 }
  0x5e   :  { %754 = vmatpush1.bf16.msra.mxu0 %v753_v42  ;;  %692 = vmatprep.subr.bf16.mxu1 %v691_v43  ;;  %v336_v34 = vld [vmem:[#allocation7 + $0xf8] sm:$0xff]  ;;  %v398_v35 = vld [vmem:[#allocation7 + $0x2e8] sm:$0xff]  ;;  %v773_v38 = vpack.c.bf16 %v395_v32, %v393_v30  ;;  %v333_v40 = vld [vmem:[#allocation7 + $0xe0] sm:$0xff] }
  0x5f   :  { %756 = vmatprep.subr.bf16.mxu0 %v755_v47  ;;  %v400_v36 = vld [vmem:[#allocation7 + $0x2f8] sm:$0xff]  ;;  %v711_v39 = vpack.c.bf16 %v336_v34, %v334_v33  ;;  %v335_v41 = vld [vmem:[#allocation7 + $0xf0] sm:$0xff]  ;;  %v397_v42 = vld [vmem:[#allocation7 + $0x2e0] sm:$0xff] }
  0x60   :  { %v775_v43 = vpack.c.bf16 %v400_v36, %v398_v35  ;;  %v399_v44 = vld [vmem:[#allocation7 + $0x2f0] sm:$0xff]  ;;  %v338_v45 = vld [vmem:[#allocation7 + $0x108] sm:$0xff]  ;;  %v340_v46 = vld [vmem:[#allocation7 + $0x118] sm:$0xff]  ;;  %v713_v49 = vpack.c.bf16 %v335_v41, %v333_v40 }
  0x61   :  { %694 = vmatpush1.bf16.msra.mxu1 %v693_v53  ;;  %v402_v47 = vld [vmem:[#allocation7 + $0x308] sm:$0xff]  ;;  %v404_v48 = vld [vmem:[#allocation7 + $0x318] sm:$0xff]  ;;  %v777_v50 = vpack.c.bf16 %v399_v44, %v397_v42  ;;  %v715_v51 = vpack.c.bf16 %v340_v46, %v338_v45  ;;  %v337_v52 = vld [vmem:[#allocation7 + $0x100] sm:$0xff] }
  0x62   :  { %758 = vmatpush1.bf16.msra.mxu0 %v757_v54  ;;  %696 = vmatprep.subr.bf16.mxu1 %v695_v55  ;;  %v339_v53 = vld [vmem:[#allocation7 + $0x110] sm:$0xff]  ;;  %v401_v54 = vld [vmem:[#allocation7 + $0x300] sm:$0xff]  ;;  %v779_v55 = vpack.c.bf16 %v404_v48, %v402_v47  ;;  %v342_v57 = vld [vmem:[#allocation7 + $0x128] sm:$0xff] }
  0x63   :  { %760 = vmatprep.subr.bf16.mxu0 %v759_v59  ;;  %v403_v56 = vld [vmem:[#allocation7 + $0x310] sm:$0xff]  ;;  %v344_v58 = vld [vmem:[#allocation7 + $0x138] sm:$0xff]  ;;  %v406_v59 = vld [vmem:[#allocation7 + $0x328] sm:$0xff]  ;;  %v717_v61 = vpack.c.bf16 %v339_v53, %v337_v52 }
  0x64   :  { %v408_v60 = vld [vmem:[#allocation7 + $0x338] sm:$0xff]  ;;  %v781_v62 = vpack.c.bf16 %v403_v56, %v401_v54  ;;  %v719_v63 = vpack.c.bf16 %v344_v58, %v342_v57  ;;  %v341_v0 = vld [vmem:[#allocation7 + $0x120] sm:$0xff]  ;;  %v407_v4 = vld [vmem:[#allocation7 + $0x330] sm:$0xff] }
  0x65   :  { %698 = vmatpush1.bf16.msra.mxu1 %v697_v1  ;;  %v343_v1 = vld [vmem:[#allocation7 + $0x130] sm:$0xff]  ;;  %v346_v5 = vld [vmem:[#allocation7 + $0x148] sm:$0xff]  ;;  %v348_v6 = vld [vmem:[#allocation7 + $0x158] sm:$0xff] }
  0x66   :  { %762 = vmatpush1.bf16.msra.mxu0 %v761_v2  ;;  %700 = vmatprep.subr.bf16.mxu1 %v699_v3  ;;  %v405_v2 = vld [vmem:[#allocation7 + $0x320] sm:$0xff]  ;;  %v783_v3 = vpack.c.bf16 %v408_v60, %v406_v59  ;;  %v412_v8 = vld [vmem:[#allocation7 + $0x358] sm:$0xff]  ;;  %v721_v9 = vpack.c.bf16 %v343_v1, %v341_v0  ;;  %v723_v11 = vpack.c.bf16 %v348_v6, %v346_v5  ;;  %v411_v16 = vld [vmem:[#allocation7 + $0x350] sm:$0xff] }
  0x67   :  { %764 = vmatprep.subr.bf16.mxu0 %v763_v7  ;;  %v410_v7 = vld [vmem:[#allocation7 + $0x348] sm:$0xff]  ;;  %v785_v10 = vpack.c.bf16 %v407_v4, %v405_v2  ;;  %v345_v12 = vld [vmem:[#allocation7 + $0x140] sm:$0xff]  ;;  %v352_v18 = vld [vmem:[#allocation7 + $0x178] sm:$0xff] }
  0x68   :  { %v350_v17 = vld [vmem:[#allocation7 + $0x168] sm:$0xff]  ;;  %v416_v20 = vld [vmem:[#allocation7 + $0x378] sm:$0xff]  ;;  %v349_v24 = vld [vmem:[#allocation7 + $0x160] sm:$0xff] }
  0x69   :  { %702 = vmatpush1.bf16.msra.mxu1 %v701_v13  ;;  %v347_v13 = vld [vmem:[#allocation7 + $0x150] sm:$0xff]  ;;  %v727_v23 = vpack.c.bf16 %v352_v18, %v350_v17  ;;  %v354_v29 = vld [vmem:[#allocation7 + $0x188] sm:$0xff]  ;;  %v356_v30 = vld [vmem:[#allocation7 + $0x198] sm:$0xff] }
  0x6a   :  { %766 = vmatpush1.bf16.msra.mxu0 %v765_v14  ;;  %704 = vmatprep.subr.bf16.mxu1 %v703_v15  ;;  %v409_v14 = vld [vmem:[#allocation7 + $0x340] sm:$0xff]  ;;  %v787_v15 = vpack.c.bf16 %v412_v8, %v410_v7  ;;  %v725_v21 = vpack.c.bf16 %v347_v13, %v345_v12  ;;  %v415_v28 = vld [vmem:[#allocation7 + $0x370] sm:$0xff]  ;;  %v420_v32 = vld [vmem:[#allocation7 + $0x398] sm:$0xff]  ;;  %v731_v35 = vpack.c.bf16 %v356_v30, %v354_v29 }
  0x6b   :  { %768 = vmatprep.subr.bf16.mxu0 %v767_v19  ;;  %v414_v19 = vld [vmem:[#allocation7 + $0x368] sm:$0xff]  ;;  %v789_v22 = vpack.c.bf16 %v411_v16, %v409_v14  ;;  %v353_v36 = vld [vmem:[#allocation7 + $0x180] sm:$0xff]  ;;  %v419_v40 = vld [vmem:[#allocation7 + $0x390] sm:$0xff] }
  0x6c   :  { %v358_v41 = vld [vmem:[#allocation7 + $0x1a8] sm:$0xff]  ;;  %v360_v42 = vld [vmem:[#allocation7 + $0x1b8] sm:$0xff]  ;;  %v357_v48 = vld [vmem:[#allocation7 + $0x1a0] sm:$0xff] }
  0x6d   :  { %706 = vmatpush1.bf16.msra.mxu1 %v705_v25  ;;  %v351_v25 = vld [vmem:[#allocation7 + $0x170] sm:$0xff]  ;;  %v424_v44 = vld [vmem:[#allocation7 + $0x3b8] sm:$0xff]  ;;  %v735_v47 = vpack.c.bf16 %v360_v42, %v358_v41  ;;  %v362_v53 = vld [vmem:[#allocation7 + $0x1c8] sm:$0xff] }
  0x6e   :  { %770 = vmatpush1.bf16.msra.mxu0 %v769_v26  ;;  %708 = vmatprep.subr.bf16.mxu1 %v707_v27  ;;  %v413_v26 = vld [vmem:[#allocation7 + $0x360] sm:$0xff]  ;;  %v791_v27 = vpack.c.bf16 %v416_v20, %v414_v19  ;;  %v729_v33 = vpack.c.bf16 %v351_v25, %v349_v24  ;;  %v423_v52 = vld [vmem:[#allocation7 + $0x3b0] sm:$0xff]  ;;  %v364_v54 = vld [vmem:[#allocation7 + $0x1d8] sm:$0xff] }
  0x6f   :  { %772 = vmatprep.subr.bf16.mxu0 %v771_v31  ;;  %v418_v31 = vld [vmem:[#allocation7 + $0x388] sm:$0xff]  ;;  %v793_v34 = vpack.c.bf16 %v415_v28, %v413_v26  ;;  %v428_v56 = vld [vmem:[#allocation7 + $0x3d8] sm:$0xff]  ;;  %v739_v59 = vpack.c.bf16 %v364_v54, %v362_v53  ;;  %v427_v1 = vld [vmem:[#allocation7 + $0x3d0] sm:$0xff] }
  0x70   :  { %v368_v4 = vld [vmem:[#allocation7 + $0x1f8] sm:$0xff]  ;;  %v430_v5 = vld [vmem:[#allocation7 + $0x3e8] sm:$0xff]  ;;  %v365_v8 = vld [vmem:[#allocation7 + $0x1e0] sm:$0xff] }
  0x71   :  { %710 = vmatpush1.bf16.msra.mxu1 %v709_v37  ;;  %v355_v37 = vld [vmem:[#allocation7 + $0x190] sm:$0xff]  ;;  %v432_v7 = vld [vmem:[#allocation7 + $0x3f8] sm:$0xff]  ;;  %v429_v12 = vld [vmem:[#allocation7 + $0x3e0] sm:$0xff] }
  0x72   :  { %774 = vmatpush1.bf16.msra.mxu0 %v773_v38  ;;  %712 = vmatprep.subr.bf16.mxu1 %v711_v39  ;;  %v417_v38 = vld [vmem:[#allocation7 + $0x380] sm:$0xff]  ;;  %v795_v39 = vpack.c.bf16 %v420_v32, %v418_v31  ;;  %v733_v45 = vpack.c.bf16 %v355_v37, %v353_v36  ;;  %v431_v13 = vld [vmem:[#allocation7 + $0x3f0] sm:$0xff] }
  0x73   :  { %776 = vmatprep.subr.bf16.mxu0 %v775_v43  ;;  %v422_v43 = vld [vmem:[#allocation7 + $0x3a8] sm:$0xff]  ;;  %v797_v46 = vpack.c.bf16 %v419_v40, %v417_v38  ;;  %v809_v14 = vpack.c.bf16 %v431_v13, %v429_v12  ;;  %v120_v18 = vld [vmem:[%s1004_s2] sm:$0xf] }
  0x74   :  { %v433_v38 = vld [vmem:[%s1006_s4] sm:$0x3] }
  0x75   :  { %714 = vmatpush1.bf16.msra.mxu1 %v713_v49  ;;  %v359_v49 = vld [vmem:[#allocation7 + $0x1b0] sm:$0xff] }
  0x76   :  { %778 = vmatpush1.bf16.msra.mxu0 %v777_v50  ;;  %716 = vmatprep.subr.bf16.mxu1 %v715_v51  ;;  %v421_v50 = vld [vmem:[#allocation7 + $0x3a0] sm:$0xff]  ;;  %v799_v51 = vpack.c.bf16 %v424_v44, %v422_v43  ;;  %v737_v57 = vpack.c.bf16 %v359_v49, %v357_v48  ;;  %v589_v42 = vld [vmem:[%s1007_s5] sm:$0x3] }
  0x77   :  { %780 = vmatprep.subr.bf16.mxu0 %v779_v55  ;;  %v426_v55 = vld [vmem:[#allocation7 + $0x3c8] sm:$0xff]  ;;  %v801_v58 = vpack.c.bf16 %v423_v52, %v421_v50 }
  0x78   :  { %v803_v60 = vpack.c.bf16 %v428_v56, %v426_v55 }
  0x79   :  { %718 = vmatpush1.bf16.msra.mxu1 %v717_v61  ;;  %v361_v61 = vld [vmem:[#allocation7 + $0x1c0] sm:$0xff] }
  0x7a   :  { %782 = vmatpush1.bf16.msra.mxu0 %v781_v62  ;;  %720 = vmatprep.subr.bf16.mxu1 %v719_v63  ;;  %v363_v62 = vld [vmem:[#allocation7 + $0x1d0] sm:$0xff]  ;;  %v425_v63 = vld [vmem:[#allocation7 + $0x3c0] sm:$0xff] }
  0x7b   :  { %784 = vmatprep.subr.bf16.mxu0 %v783_v3  ;;  %v741_v0 = vpack.c.bf16 %v363_v62, %v361_v61  ;;  %v805_v2 = vpack.c.bf16 %v427_v1, %v425_v63  ;;  %v366_v3 = vld [vmem:[#allocation7 + $0x1e8] sm:$0xff] }
  0x7c   :  { %v743_v6 = vpack.c.bf16 %v368_v4, %v366_v3 }
  0x7d   :  { %722 = vmatpush1.bf16.msra.mxu1 %v721_v9  ;;  %v367_v9 = vld [vmem:[#allocation7 + $0x1f0] sm:$0xff] }
  0x7e   :  { %786 = vmatpush1.bf16.msra.mxu0 %v785_v10  ;;  %724 = vmatprep.subr.bf16.mxu1 %v723_v11  ;;  %v807_v10 = vpack.c.bf16 %v432_v7, %v430_v5  ;;  %v745_v11 = vpack.c.bf16 %v367_v9, %v365_v8 }
  0x7f   :  { %788 = vmatprep.subr.bf16.mxu0 %v787_v15  ;;  %v122_v15 = vlaneseq }
  0x81   :  { %726 = vmatpush1.bf16.msra.mxu1 %v725_v21  ;;  %v123_v16 = vshrl.u32 %v122_v15, 7 }
  0x82   :  { %790 = vmatpush1.bf16.msra.mxu0 %v789_v22  ;;  %728 = vmatprep.subr.bf16.mxu1 %v727_v23 }
  0x83   :  { %792 = vmatprep.subr.bf16.mxu0 %v791_v27  ;;  %v124_v17 = vsub.s32 0, %v123_v16  ;;  %v132_v19 = vsub.s32 2, %v123_v16  ;;  %v128_v20 = vsub.s32 1, %v123_v16  ;;  %v136_v21 = vsub.s32 3, %v123_v16 }
  0x85   :  { %730 = vmatpush1.bf16.msra.mxu1 %v729_v33  ;;  %v125_v22 = vrot.slane %v120_v18, %v124_v17  ;;  %v133_v23 = vrot.slane %v120_v18, %v132_v19  ;;  %v129_v24 = vrot.slane %v120_v18, %v128_v20  ;;  %v137_v25 = vrot.slane %v120_v18, %v136_v21 }
  0x86   :  { %794 = vmatpush1.bf16.msra.mxu0 %v793_v34  ;;  %732 = vmatprep.subr.bf16.mxu1 %v731_v35  ;;  %v442_v40 = vrot.slane %v433_v38, %v128_v20  ;;  %v594_v49 = vrot.slane %v589_v42, %v124_v17 }
  0x87   :  { %796 = vmatprep.subr.bf16.mxu0 %v795_v39  ;;  %v438_v39 = vrot.slane %v433_v38, %v124_v17 }
  0x89   :  { %734 = vmatpush1.bf16.msra.mxu1 %v733_v45 }
  0x8a   :  { %798 = vmatpush1.bf16.msra.mxu0 %v797_v46  ;;  %736 = vmatprep.subr.bf16.mxu1 %v735_v47 }
  0x8b   :  { %800 = vmatprep.subr.bf16.mxu0 %v799_v51  ;;  %v598_v51 = vrot.slane %v589_v42, %v128_v20 }
  0x8d   :  { %738 = vmatpush1.bf16.msra.mxu1 %v737_v57  ;;  %v634_v57 = vld [vmem:[#allocation2] ss:$0 sm:$0xff] }
  0x8e   :  { %802 = vmatpush1.bf16.msra.mxu0 %v801_v58  ;;  %740 = vmatprep.subr.bf16.mxu1 %v739_v59 }
  0x8f   :  { %804 = vmatprep.subr.bf16.mxu0 %v803_v60 }
  0x91   :  { %742 = vmatpush1.bf16.msra.mxu1 %v741_v0 }
  0x92   :  { %806 = vmatpush1.bf16.msra.mxu0 %v805_v2  ;;  %744 = vmatprep.subr.bf16.mxu1 %v743_v6 }
  0x93   :  { %808 = vmatprep.subr.bf16.mxu0 %v807_v10 }
  0x95   :  { %746 = vmatpush1.bf16.msra.mxu1 %v745_v11 }
  0x96   :  { %810 = vmatpush1.bf16.msra.mxu0 %v809_v14 }
 0x12a   :  { %v225_v26 = vpop.f32.mrb[0].mxu0 }
 0x12b   :  { %v226_v27 = vadd.f32 %v225_v26, %v125_v22  ;;  %v296_v28 = vpop.f32.mrb[0].mxu1  ;;  %v227_v29 = vpop.f32.mrb[1].mxu0 }
 0x12c   :  { %v297_v30 = vadd.f32 %v296_v28, %v133_v23  ;;  %v228_v31 = vadd.f32 %v227_v29, %v129_v24  ;;  %v298_v32 = vpop.f32.mrb[1].mxu1 }
 0x12d   :  { %v299_v33 = vadd.f32 %v298_v32, %v137_v25  ;;  %v301_v36 = vmax.f32 %v226_v27, 0.0 }
 0x12e   :  { %v303_v34 = vmax.f32 %v297_v30, 0.0  ;;  %v302_v35 = vmax.f32 %v228_v31, 0.0 }
 0x12f   :  { %v304_v37 = vmax.f32 %v299_v33, 0.0 }
 0x130   :  { %509 = vmatprep.mubr.f32.mxu1 %v302_v35 }
 0x131   :  { %580 = vmatprep.mubr.f32.mxu0 %v304_v37  ;;  %510 = vmatmul.mubr.f32.vlgmr.msra.gmra.mrb[2].mxu1 %v301_v36 }
 0x132   :  { %581 = vmatmul.mubr.f32.vlgmr.msra.gmra.mrb[2].mxu0 %v303_v34 }
 0x204   :  { %v511_v41 = vpop.f32.mrb[2].mxu1 }
 0x205   :  { %v512_v43 = vadd.f32 %v511_v41, %v438_v39  ;;  %v582_v44 = vpop.f32.mrb[2].mxu0  ;;  %v513_v45 = vpop.f32.mrb[3].mxu1 }
 0x206   :  { %v514_v46 = vadd.f32 %v513_v45, %v442_v40  ;;  %v584_v47 = vpop.f32.mrb[3].mxu0 }
 0x207   :  { %v583_v48 = vadd.f32 %v582_v44, %v512_v43 }
 0x208   :  { %v585_v50 = vadd.f32 %v584_v47, %v514_v46 }
 0x209   :  { %v587_v52 = vmax.f32 %v583_v48, 0.0 }
 0x20a   :  { %v588_v53 = vmax.f32 %v585_v50, 0.0 }
 0x20b   :  { %v601_v54 = vmul.f32 %v594_v49, %v587_v52 }
 0x20c   :  { %v602_v55 = vmul.f32 %v598_v51, %v588_v53 }
 0x20e   :  { %v603_v56 = vadd.f32 %v602_v55, %v601_v54 }
 0x210   :  { %604 = vadd.xlane.f32.xlu0 %v603_v56 }
 0x29d   :  { %v605_v58 = vpop.xlane.xlu0 %604 }
 0x29e   :  { %v613_v59 = vadd.f32 %v634_v57, %v605_v58 }
 0x2a0   :  { %v614_v60 = vsub.f32 0.0, %v613_v59 }
 0x2a2   :  { %v615_v61 = vmul.f32 1.442695, %v614_v60 }
 0x2a4   :  { %823 = vpow2.f32 %v615_v61 }
 0x2ae   :  { %v824_v62 = vpop.eup %823 }
 0x2af   :  { %v617_v63 = vadd.f32 1.0, %v824_v62 }
 0x2b1   :  { %825 = vrcp.f32 %v617_v63 }
 0x2bb   :  { %v826_v0 = vpop.eup %825 }
 0x2bc   :  { %621 = vst.msk [vmem:[%s1009_s7] sm:$0xff] %vm620_vm2, %v826_v0 }
 0x2bd   :  { %626 = vsyncpa [#allocation4], 1 }
 0x2be   :  { %627 = vsyncpa [#allocation6], 1 }

</bundles_post_ra>
